<compile_context>
chip_gen: v6e
topology: v6e:2x2x1
jax: 0.10.0
libtpu: 0.0.40
codegen_flags: <defaults>
</compile_context>

<pallas_src>
import jax
import jax.numpy as jnp
from jax.experimental import pallas as pl
from jax.experimental.pallas import tpu as pltpu


def _round_up(x: int, m: int) -> int:
    return ((x + m - 1) // m) * m


def _tpu_defaults():
    """Per-generation tiling / VMEM budgets (conservative fallback)."""
    gen = None
    try:
        kind = jax.devices()[0].device_kind.lower()
        for g in (7, 6, 5, 4):
            if f"v{g}" in kind or f"tpu{g}" in kind:
                gen = g
                break
    except Exception:
        gen = None
    if gen is not None and gen <= 6:
        # v4/v5e/v6e: 128 MiB physical VMEM; lowest HBM BW -> big L tiles.
        return dict(max_tn=2048, vmem_cap=96 << 20, single_block_bytes=16 << 20)
    # v7x (64 MiB VMEM per TensorCore) or unknown: conservative budgets.
    return dict(max_tn=1024, vmem_cap=48 << 20, single_block_bytes=6 << 20)


def _pick_tile_n(l_pad: int, max_tn: int, fits) -> int:
    """Largest multiple of 128 that divides l_pad, is <= max_tn and fits VMEM."""
    t = max((min(max_tn, l_pad) // 128) * 128, 128)
    while t > 128:
        if l_pad % t == 0 and fits(t):
            return t
        t -= 128
    return 128


# ---------------------------------------------------------------------------
# Kernels
# ---------------------------------------------------------------------------

def _dense_kernel(x_ref, w1_ref, b1_ref, w2_ref, b2_ref, o_ref):
    # h = tanh(x @ W1 + b1) in f32, then y = h @ W2 + b2 (f32 accumulation).
    # Used both as the no-grid fast path and as the recompute-h tiled body.
    h = jnp.tanh(
        jnp.dot(x_ref[...], w1_ref[...], preferred_element_type=jnp.float32)
        + b1_ref[...].astype(jnp.float32))
    y = jnp.dot(h.astype(w2_ref.dtype), w2_ref[...],
                preferred_element_type=jnp.float32)
    o_ref[...] = (y + b2_ref[...].astype(jnp.float32)).astype(o_ref.dtype)


def _cached_h_kernel(x_ref, w1_ref, b1_ref, w2_ref, b2_ref, o_ref, h_ref):
    # Grid = (M tiles, L tiles); L is the inner, sequential ("arbitrary") axis.
    # h is computed once per M tile and cached in VMEM scratch (in the weight
    # dtype -- the second MXU pass consumes that dtype anyway).
    @pl.when(pl.program_id(1) == 0)
    def _():
        h = jnp.dot(x_ref[...], w1_ref[...],
                    preferred_element_type=jnp.float32)
        h_ref[...] = jnp.tanh(h + b1_ref[...].astype(jnp.float32)
                              ).astype(h_ref.dtype)

    y = jnp.dot(h_ref[...], w2_ref[...], preferred_element_type=jnp.float32)
    o_ref[...] = (y + b2_ref[...].astype(jnp.float32)).astype(o_ref.dtype)


# ---------------------------------------------------------------------------
# Parameter prep (do this ONCE at init, not per forward call)
# ---------------------------------------------------------------------------

def prepare_prefix_encoder_params(w1, b1, w2, b2, *, weight_dtype=jnp.bfloat16):
    """Cast weights to the streaming dtype and pad L to a multiple of 128.

    w1: (H, P); b1: (P,)/(1,P); w2: (P, L); b2: (L,)/(1,L).
    The zero-padded W2/b2 columns are sliced off again after the kernel, so
    numerics are unaffected by the padding.
    """
    H, P = w1.shape
    P2, L = w2.shape
    assert P2 == P, "w1/w2 inner dims must match"
    l_pad = _round_up(L, 128)

    w1 = jnp.asarray(w1, weight_dtype)
    b1 = jnp.asarray(b1, weight_dtype).reshape(1, P)
    w2 = jnp.asarray(w2, weight_dtype)
    b2 = jnp.asarray(b2, weight_dtype).reshape(1, L)
    if l_pad != L:
        w2 = jnp.pad(w2, ((0, 0), (0, l_pad - L)))
        b2 = jnp.pad(b2, ((0, 0), (0, l_pad - L)))
    # NOTE: on v5e, additionally padding P up to a multiple of 128 here (zeros
    # in W1 cols / b1 / W2 rows is mathematically a no-op) can improve MXU
    # utilization for ragged P at the cost of a little extra W2 traffic.
    return dict(w1=w1, b1=b1, w2=w2, b2=b2, L=L)


# ---------------------------------------------------------------------------
# Forward wrapper
# ---------------------------------------------------------------------------

def prefix_encoder(prefix, params, *, max_tile_m: int = 256,
                   max_tile_n: int | None = None, force_tiled: bool = False):
    """prefix: (B, S, H). params: output of prepare_prefix_encoder_params.
    Returns (B, S, L) in prefix.dtype."""
    w1, b1, w2, b2, L = (params["w1"], params["b1"], params["w2"],
                         params["b2"], params["L"])
    B, S, H = prefix.shape
    assert w1.shape[0] == H, "prefix hidden dim must match w1"
    P = w1.shape[1]
    l_pad = w2.shape[1]
    M = B * S

    wdt = w1.dtype
    out_dt = prefix.dtype
    itm = jnp.dtype(wdt).itemsize
    out_itm = jnp.dtype(out_dt).itemsize

    budgets = _tpu_defaults()
    if max_tile_n is None:
        max_tile_n = budgets["max_tn"]

    x2d = prefix.reshape(M, H).astype(wdt)

    footprint = ((M * H + H * P + P + P * l_pad + l_pad) * itm
                 + M * l_pad * out_itm)

    # ----------------- small, latency-bound fast path -----------------------
    # Whole problem resident in VMEM, no grid / pipeline machinery at all.
    if footprint <= budgets["single_block_bytes"] and not force_tiled:
        out = pl.pallas_call(
            _dense_kernel,
            out_shape=jax.ShapeDtypeStruct((M, l_pad), out_dt),
            compiler_params=pltpu.CompilerParams(vmem_limit_bytes=32 << 20),
        )(x2d, w1, b1, w2, b2)
        return out[:, :L].reshape(B, S, L)

    # ----------------- tiled, W2-streaming path -----------------------------
    sub = {1: 32, 2: 16}.get(itm, 8)              # sublane multiple per dtype
    tm = min(_round_up(max_tile_m, sub), _round_up(M, sub))
    m_pad = _round_up(M, tm)
    if m_pad != M:
        x2d = jnp.pad(x2d, ((0, m_pad - M), (0, 0)))

    budget = budgets["vmem_cap"] - (6 << 20)      # headroom for scratch/etc.

    def _need(tn):
        # Double-buffered inputs/outputs + the (possible) h scratch.
        return (2 * ((tm * H + H * P + P + P * tn + tn) * itm
                     + tm * tn * out_itm)
                + tm * P * itm)

    tn = _pick_tile_n(l_pad, max_tile_n, lambda t: _need(t) <= budget)
    gm, gn = m_pad // tm, l_pad // tn
    vmem_limit = min(budgets["vmem_cap"], max(_need(tn) + (4 << 20), 16 << 20))

    in_specs = [
        pl.BlockSpec((tm, H), lambda i, j: (i, 0)),   # x rows (per M tile)
        pl.BlockSpec((H, P), lambda i, j: (0, 0)),    # W1 (fetched once)
        pl.BlockSpec((1, P), lambda i, j: (0, 0)),    # b1 (fetched once)
        pl.BlockSpec((P, tn), lambda i, j: (0, j)),   # W2 streamed col blocks
        pl.BlockSpec((1, tn), lambda i, j: (0, j)),   # b2 streamed
    ]
    out_spec = pl.BlockSpec((tm, tn), lambda i, j: (i, j))

    if gm >= 2:
        # Enough M tiles: megacore shards M; cache h once per M tile.
        kernel = _cached_h_kernel
        scratch = [pltpu.VMEM((tm, P), wdt)]
        dims = ("parallel", "arbitrary")
        h_passes = 1
    else:
        # Single M tile (typical prefix tuning): recompute the tiny first GEMM
        # per L tile so BOTH axes are parallel -> on v7x both TensorCores
        # share the L-tile W2 stream.
        kernel = _dense_kernel
        scratch = []
        dims = ("parallel", "parallel")
        h_passes = gn

    cost = pl.CostEstimate(
        flops=2 * m_pad * H * P * h_passes + 2 * m_pad * P * l_pad,
        transcendentals=m_pad * P * h_passes,
        bytes_accessed=((H * P + P + m_pad * H + gm * (P * l_pad + l_pad)) * itm
                        + m_pad * l_pad * out_itm),
    )

    out = pl.pallas_call(
        kernel,
        out_shape=jax.ShapeDtypeStruct((m_pad, l_pad), out_dt),
        grid_spec=pltpu.PrefetchScalarGridSpec(
            num_scalar_prefetch=0,
            grid=(gm, gn),
            in_specs=in_specs,
            out_specs=out_spec,
            scratch_shapes=scratch,
        ),
        compiler_params=pltpu.CompilerParams(
            dimension_semantics=dims,
            vmem_limit_bytes=int(vmem_limit)),
        cost_estimate=cost,
    )(x2d, w1, b1, w2, b2)

    return out[:M, :L].reshape(B, S, L)


# ---------------------------------------------------------------------------
# Pure-JAX reference of the PyTorch forward (f32 weights, f32 accumulation).
# ---------------------------------------------------------------------------

def _reference(prefix, w1, b1, w2, b2):
    h = jnp.tanh(jnp.dot(prefix, w1, preferred_element_type=jnp.float32)
                 + b1.reshape(-1))
    y = jnp.dot(h, w2, preferred_element_type=jnp.float32) + b2.reshape(-1)
    return y.astype(prefix.dtype)


if __name__ == "__main__":
    key = jax.random.PRNGKey(0)

    def make_inputs(k, batch, seq, hidden, prefix_hidden, num_layers, scale=0.05):
        L = num_layers * 2 * hidden
        kx, kw1, kb1, kw2, kb2 = jax.random.split(k, 5)
        prefix = jax.random.normal(kx, (batch, seq, hidden), jnp.float32)
        w1 = jax.random.normal(kw1, (hidden, prefix_hidden), jnp.float32) * scale
        b1 = jax.random.normal(kb1, (prefix_hidden,), jnp.float32) * scale
        w2 = jax.random.normal(kw2, (prefix_hidden, L), jnp.float32) * scale
        b2 = jax.random.normal(kb2, (L,), jnp.float32) * scale
        return prefix, w1, b1, w2, b2

    keys = jax.random.split(key, 4)

    # --- Test 1: tiny config -> single-block (no-grid) fast path, f32 -------
    prefix, w1, b1, w2, b2 = make_inputs(keys[0], 2, 8, 32, 64, 2)
    params = prepare_prefix_encoder_params(w1, b1, w2, b2,
                                           weight_dtype=jnp.float32)
    out = jax.block_until_ready(prefix_encoder(prefix, params))
    ref = _reference(prefix, w1, b1, w2, b2)
    assert out.shape == ref.shape
    assert jnp.allclose(out, ref, atol=1e-4, rtol=1e-4)

    # --- Test 2: tiled path, f32, ragged M (21) and ragged L (576 -> 640) ---
    prefix, w1, b1, w2, b2 = make_inputs(keys[1], 3, 7, 96, 160, 3)
    params = prepare_prefix_encoder_params(w1, b1, w2, b2,
                                           weight_dtype=jnp.float32)
    out = jax.block_until_ready(prefix_encoder(prefix, params, force_tiled=True))
    ref = _reference(prefix, w1, b1, w2, b2)
    assert out.shape == ref.shape
    assert jnp.allclose(out, ref, atol=1e-4, rtol=1e-4)

    # --- Test 3: tiled path, bf16-streamed weights, multiple L tiles --------
    prefix, w1, b1, w2, b2 = make_inputs(keys[2], 2, 16, 64, 128, 32)
    params = prepare_prefix_encoder_params(w1, b1, w2, b2)   # bf16 default
    out = jax.block_until_ready(prefix_encoder(prefix, params, force_tiled=True))
    ref = _reference(prefix, w1, b1, w2, b2)
    assert out.shape == ref.shape
    assert jnp.allclose(out, ref, atol=3e-2, rtol=3e-2)

    # --- Test 4: tiled path, bf16, >=2 M tiles (cached-h kernel variant) ----
    prefix, w1, b1, w2, b2 = make_inputs(keys[3], 4, 80, 64, 128, 32)
    params = prepare_prefix_encoder_params(w1, b1, w2, b2)
    out = jax.block_until_ready(prefix_encoder(prefix, params, force_tiled=True))
    ref = _reference(prefix, w1, b1, w2, b2)
    assert out.shape == ref.shape
    assert jnp.allclose(out, ref, atol=3e-2, rtol=3e-2)

    print("KERNEL_OK")
</pallas_src>

<mosaic_0001>
module attributes {stable_mosaic.version = 11 : i64} {
  func.func @_dense_kernel(%arg0: memref<16x32xf32, #tpu.memory_space<vmem>>, %arg1: memref<32x64xf32, #tpu.memory_space<vmem>>, %arg2: memref<1x64xf32, #tpu.memory_space<vmem>>, %arg3: memref<64x128xf32, #tpu.memory_space<vmem>>, %arg4: memref<1x128xf32, #tpu.memory_space<vmem>>, %arg5: memref<16x128xf32, #tpu.memory_space<vmem>>) attributes {dimension_semantics = [], scalar_prefetch = 0 : i64, scratch_operands = 0 : i64, tpu.core_type = #tpu.core_type<tc>} {
    %c0 = arith.constant 0 : index
    %c0_0 = arith.constant 0 : index
    %0 = vector.load %arg0[%c0, %c0_0] : memref<16x32xf32, #tpu.memory_space<vmem>>, vector<16x32xf32>
    %c0_1 = arith.constant 0 : index
    %c0_2 = arith.constant 0 : index
    %1 = vector.load %arg1[%c0_1, %c0_2] : memref<32x64xf32, #tpu.memory_space<vmem>>, vector<32x64xf32>
    %cst = arith.constant dense<0.000000e+00> : vector<16x64xf32>
    %2 = tpu.matmul %0, %1, %cst {dimension_numbers = #tpu.dot_dimension_numbers<[1], [0], [0], [1], [0, 0, 1, 1], [], []>} : vector<16x32xf32>, vector<32x64xf32>, vector<16x64xf32> -> vector<16x64xf32>
    %c0_3 = arith.constant 0 : index
    %c0_4 = arith.constant 0 : index
    %3 = vector.load %arg2[%c0_3, %c0_4] : memref<1x64xf32, #tpu.memory_space<vmem>>, vector<1x64xf32>
    %4 = vector.broadcast %3 : vector<1x64xf32> to vector<16x64xf32>
    %5 = arith.addf %2, %4 : vector<16x64xf32>
    %6 = math.tanh %5 : vector<16x64xf32>
    %c0_5 = arith.constant 0 : index
    %c0_6 = arith.constant 0 : index
    %7 = vector.load %arg3[%c0_5, %c0_6] : memref<64x128xf32, #tpu.memory_space<vmem>>, vector<64x128xf32>
    %cst_7 = arith.constant dense<0.000000e+00> : vector<16x128xf32>
    %8 = tpu.matmul %6, %7, %cst_7 {dimension_numbers = #tpu.dot_dimension_numbers<[1], [0], [0], [1], [0, 0, 1, 1], [], []>} : vector<16x64xf32>, vector<64x128xf32>, vector<16x128xf32> -> vector<16x128xf32>
    %c0_8 = arith.constant 0 : index
    %c0_9 = arith.constant 0 : index
    %9 = vector.load %arg4[%c0_8, %c0_9] : memref<1x128xf32, #tpu.memory_space<vmem>>, vector<1x128xf32>
    %10 = vector.broadcast %9 : vector<1x128xf32> to vector<16x128xf32>
    %11 = arith.addf %8, %10 : vector<16x128xf32>
    %c0_10 = arith.constant 0 : index
    %c0_11 = arith.constant 0 : index
    %12 = vector.load %arg5[%c0_10, %c0_11] : memref<16x128xf32, #tpu.memory_space<vmem>>, vector<16x128xf32>
    tpu.vector_store %arg5[%c0_10, %c0_11], %11 {strides = array<i32>} : memref<16x128xf32, #tpu.memory_space<vmem>>, vector<16x128xf32>,
    return
  }
}

</mosaic_0001>

<bundles_post_ra>
// kernel: tpu_custom_call.1
= control target key start
LH: loop header
LB: loop body
LE: loop exit
PB: predicated region body
PF: predicated region fallthrough
CT: control target
= control target key end

     0   :  { %10 = vsyncpa [#allocation3], 0  ;;  %s492_s0 = inlined_call_operand.hbm [shape: f32[16,32], index: 0, kind: input, shape index: {}]   ;;  %s493_s1 = inlined_call_operand.hbm [shape: f32[32,64], index: 1, kind: input, shape index: {}]   ;;  %s494_s2 = inlined_call_operand.vmem [shape: f32[1,64], index: 2, kind: input, shape index: {}]   ;;  %s495_s3 = inlined_call_operand.hbm [shape: f32[64,128], index: 3, kind: input, shape index: {}]   ;;  %s496_s4 = inlined_call_operand.vmem [shape: f32[1,128], index: 4, kind: input, shape index: {}]   ;;  %s497_s5 = inlined_call_operand.hbm [shape: f32[16,128], index: 5, kind: output, shape index: {}]  }
   0x1   :  { %11 = vsyncpa [#allocation6], 0 }
   0x2   :  { %12 = vsyncpa [#allocation4], 0  ;;  %s424_s18 = smov [#allocation5]   ;;  %s425_s20 = smov [#allocation2]  }
   0x3   :  { %s30_s19 = sshll.u32 %s424_s18, 4  ;;  %s18_s21 = sshll.u32 %s425_s20, 4  ;;  %s31_s19 = int_to_ptr.vmem [resolvable:$true] %s30_s19  ;;  %s19_s21 = int_to_ptr.vmem [resolvable:$true] %s18_s21 }
   0x4   :  { %s346_s22 = scalar_lea.vmem %s31_s19, 512  ;;  %p351_p1 = scmp.lt.s32.totalorder %s31_s19, %s31_s19 }
   0x5   :  { %p347_p0 = scmp.ne.s32.totalorder %s31_s19, %s346_s22  ;;  %p352_p2 = scmp.lt.s32.totalorder %s346_s22, %s346_s22 }
   0x7   :  { %p353_p3 = por %p352_p2, %p351_p1 }
   0x9   :  { %p354_p4 = pnand %p353_p3, %p347_p0 }
   0xb   :  { %357 = shalt.err (!%p354_p4)
}
   0xc   :  { %s426_s23 = smov 128   ;;  %s427_s24 = smov 8  }
   0xd   :  { %36 = dma.hbm_to_vmem [thread:$0]  %s493_s1, 512, %s31_s19, [#allocation6], %s426_s23, %s426_s23, %s427_s24  }
   0xe   :  { %s366_s27 = scalar_lea.vmem %s19_s21, 256  ;;  %p371_p6 = scmp.lt.s32.totalorder %s19_s21, %s19_s21 }
   0xf   :  { %p367_p5 = scmp.ne.s32.totalorder %s19_s21, %s366_s27  ;;  %p372_p7 = scmp.lt.s32.totalorder %s366_s27, %s366_s27 }
  0x11   :  { %p373_p8 = por %p372_p7, %p371_p6 }
  0x13   :  { %p374_p9 = pnand %p373_p8, %p367_p5 }
  0x15   :  { %377 = shalt.err (!%p374_p9)
}
  0x16   :  { %24 = dma.hbm_to_vmem [thread:$0]  %s492_s0, 256, %s19_s21, [#allocation3], %s426_s23, %s426_s23, %s427_s24  }
  0x17   :  { %s428_s30 = smov [#allocation7]  }
  0x18   :  { %s44_s6 = sshll.u32 %s428_s30, 4  ;;  %s45_s6 = int_to_ptr.vmem [resolvable:$true] %s44_s6 }
  0x19   :  { %s386_s7 = scalar_lea.vmem %s45_s6, 1024  ;;  %p391_p11 = scmp.lt.s32.totalorder %s45_s6, %s45_s6 }
  0x1a   :  { %p387_p10 = scmp.ne.s32.totalorder %s45_s6, %s386_s7  ;;  %p392_p12 = scmp.lt.s32.totalorder %s386_s7, %s386_s7 }
  0x1c   :  { %p393_p13 = por %p392_p12, %p391_p11 }
  0x1e   :  { %p394_p0 = pnand %p393_p13, %p387_p10 }
  0x20   :  { %397 = shalt.err (!%p394_p0)
}
  0x21   :  { %50 = dma.hbm_to_vmem [thread:$0]  %s495_s3, 1024, %s45_s6, [#allocation6], %s426_s23, %s426_s23, %s427_s24  }
  0x22   :  { %418 = dma.done.wait [#allocation3], 256  }
  0x23   :  { %419 = vsyncadd [#allocation3], 4294967040 }
  0x24   :  { %420 = dma.done.wait [#allocation6], 1536  }
  0x25   :  { %421 = vsyncadd [#allocation6], 4294965760  ;;  %vm75_vm0 = vcmask 261120   ;;  %v67_v0 = vld [vmem:[#allocation5 + $0x18] sm:$0xff]  ;;  %v66_v1 = vld [vmem:[#allocation5 + $0x10] sm:$0xff]  ;;  %vm174_vm1 = vcmask 523264  }
  0x26   :  { %298 = vmatprep.subr.mxu0 %v67_v0  ;;  %v62_v2 = vld [vmem:[#allocation2] sm:$0xff]  ;;  %v65_v3 = vld [vmem:[#allocation5 + $0x8] sm:$0xff]  ;;  %v64_v4 = vld [vmem:[#allocation5] sm:$0xff]  ;;  %s429_s11 = smov [#allocation8]  }
  0x27   :  { %299 = vmatpush3.msra.mxu0 %v67_v0  ;;  %306 = vmatprep.mubr.msk.f32.mxu0 %vm75_vm0, %v62_v2  ;;  %v63_v5 = vld [vmem:[#allocation2 + $0x8] sm:$0xff]  ;;  %v165_v7 = vld [vmem:[#allocation7 + $0x30] sm:$0xff]  ;;  %v164_v8 = vld [vmem:[#allocation7 + $0x28] sm:$0xff]  ;;  %s263_s12 = sshll.u32 %s429_s11, 4  ;;  %s264_s12 = int_to_ptr.vmem [resolvable:$true] %s263_s12 }
  0x28   :  { %300 = vmatprep.subr.mxu0 %v66_v1  ;;  %v166_v6 = vld [vmem:[#allocation7 + $0x38] sm:$0xff]  ;;  %v163_v9 = vld [vmem:[#allocation7 + $0x20] sm:$0xff]  ;;  %v161_v11 = vld [vmem:[#allocation7 + $0x10] sm:$0xff]  ;;  %p403_p2 = scmp.lt.s32.totalorder %s264_s12, %s264_s12 }
  0x29   :  { %301 = vmatpush3.msra.mxu0 %v66_v1  ;;  %309 = vmatprep.subr.mxu1 %v166_v6  ;;  %v162_v10 = vld [vmem:[#allocation7 + $0x18] sm:$0xff]  ;;  %v160_v12 = vld [vmem:[#allocation7 + $0x8] sm:$0xff]  ;;  %v159_v13 = vld [vmem:[#allocation7] sm:$0xff] }
  0x2a   :  { %302 = vmatprep.subr.mxu0 %v65_v3  ;;  %310 = vmatpush3.msra.mxu1 %v166_v6  ;;  %v276_v14 = vld [vmem:[%s494_s2] ss:$0 sm:$0xff]  ;;  %s398_s2 = scalar_lea.vmem %s264_s12, 256 }
  0x2b   :  { %303 = vmatpush3.msra.mxu0 %v65_v3  ;;  %311 = vmatprep.subr.mxu1 %v165_v7  ;;  %v279_v21 = vld [vmem:[%s496_s4] ss:$0 sm:$0xff]  ;;  %p399_p1 = scmp.ne.s32.totalorder %s264_s12, %s398_s2  ;;  %p404_p3 = scmp.lt.s32.totalorder %s398_s2, %s398_s2 }
  0x2c   :  { %304 = vmatprep.subr.mxu0 %v64_v4  ;;  %312 = vmatpush3.msra.mxu1 %v165_v7 }
  0x2d   :  { %305 = vmatpush3.msra.mxu0 %v64_v4  ;;  %313 = vmatprep.subr.mxu1 %v164_v8  ;;  %p405_p4 = por %p404_p3, %p403_p2 }
  0x2e   :  { %307 = vmatmul.mubr.msk.f32.vlgmr.msra.gmra.mxu0 %vm75_vm0, %v63_v5  ;;  %314 = vmatpush3.msra.mxu1 %v164_v8 }
  0x2f   :  { %315 = vmatprep.subr.mxu1 %v163_v9  ;;  %p406_p5 = pnand %p405_p4, %p399_p1 }
  0x30   :  { %316 = vmatpush3.msra.mxu1 %v163_v9 }
  0x31   :  { %317 = vmatprep.subr.mxu1 %v162_v10 }
  0x32   :  { %318 = vmatpush3.msra.mxu1 %v162_v10 }
  0x33   :  { %319 = vmatprep.subr.mxu1 %v161_v11 }
  0x34   :  { %320 = vmatpush3.msra.mxu1 %v161_v11 }
  0x35   :  { %321 = vmatprep.subr.mxu1 %v160_v12 }
  0x36   :  { %322 = vmatpush3.msra.mxu1 %v160_v12 }
  0x37   :  { %323 = vmatprep.subr.mxu1 %v159_v13 }
  0x38   :  { %324 = vmatpush3.msra.mxu1 %v159_v13 }
  0xee   :  { %v308_v15 = vpop.f32.mrf.mxu0 }
  0xef   :  { %v154_v16 = vadd.f32 %v308_v15, %v276_v14 }
  0xf0   :  { %v148_v17 = vpop.f32.mrf.mxu0 }
  0xf1   :  { %v149_v18 = vadd.f32 %v276_v14, %v148_v17 }
  0xf3   :  { %334 = vtanh.f32 %v149_v18 }
  0xf4   :  { %336 = vtanh.f32 %v154_v16 }
 0x100   :  { %v335_v19 = vpop.eup %334 }
 0x101   :  { %v337_v20 = vpop.eup %336  ;;  %325 = vmatprep.mubr.msk.f32.mxu1 %vm174_vm1, %v335_v19 }
 0x102   :  { %326 = vmatmul.mubr.msk.f32.vlgmr.msra.gmra.mxu1 %vm174_vm1, %v337_v20 }
 0x1c2   :  { %v327_v22 = vpop.f32.mrf.mxu1 }
 0x1c3   :  { %v253_v23 = vadd.f32 %v327_v22, %v279_v21 }
 0x1c4   :  { %v247_v24 = vpop.f32.mrf.mxu1 }
 0x1c5   :  { %257 = vst [vmem:[#allocation8 + $0x8] sm:$0xff] %v253_v23  ;;  %v248_v25 = vadd.f32 %v279_v21, %v247_v24 }
 0x1c7   :  { %256 = vst [vmem:[#allocation8] sm:$0xff] %v248_v25 }
 0x1c8   :  { %409 = shalt.err (!%p406_p5)
}
 0x1c9   :  { %269 = dma.vmem_to_hbm [thread:$0]  %s264_s12, 256, %s497_s5, [#allocation4], %s426_s23, %s426_s23, %s427_s24  }
 0x1ca   :  { %422 = dma.done.wait [#allocation4], 256  }
 0x1cb   :  { %423 = vsyncadd [#allocation4], 4294967040 }
 0x1cc   :  { %273 = vsyncpa [#allocation3], 1 }
 0x1cd   :  { %274 = vsyncpa [#allocation6], 1 }
 0x1ce   :  { %275 = vsyncpa [#allocation4], 1 }

</bundles_post_ra>
